<compile_context>
chip_gen: v6e
topology: v6e:2x2x1
jax: 0.10.0
libtpu: 0.0.40
codegen_flags: <defaults>
</compile_context>

<pallas_src>
from functools import lru_cache

import numpy as np
import jax
import jax.numpy as jnp
from jax.experimental import pallas as pl
from jax.experimental.pallas import tpu as pltpu


def _fft_matmul_kernel(x_ref, w_ref, o_ref, acc_ref):
    # K-tiled DFT matmul: bf16 operands (x cast in-kernel), f32 accumulation.
    @pl.when(pl.program_id(2) == 0)
    def _():
        acc_ref[...] = jnp.zeros_like(acc_ref)

    acc_ref[...] += jnp.dot(x_ref[...].astype(jnp.bfloat16), w_ref[...],
                            preferred_element_type=jnp.float32)

    @pl.when(pl.program_id(2) == pl.num_programs(2) - 1)
    def _():
        o_ref[...] = acc_ref[...]


@lru_cache(maxsize=8)
def _dft_weights_bf16(L: int):
    """Hermitian-half DFT weights, cached per L.

    Returns (W_cat bf16 of shape (L, Wp), Kh, Wp) where Kh = L//2 + 1 and
    W_cat[:, :Kh] = cos(2*pi*n*k/L), W_cat[:, Kh:2*Kh] = -sin(2*pi*n*k/L),
    zero-padded on the right to Wp (a multiple of 128) for lane-dense output.
    n*k is reduced mod L in exact integer arithmetic before the trig so large
    L stays accurate.
    """
    Kh = L // 2 + 1
    n = np.arange(L, dtype=np.int64)
    k = np.arange(Kh, dtype=np.int64)
    ang = 2.0 * np.pi * ((np.outer(n, k) % L).astype(np.float64)) / L
    w_re = np.cos(ang)          # Re exp(-i*ang)
    w_im = -np.sin(ang)         # Im exp(-i*ang)
    w_cat = np.concatenate([w_re, w_im], axis=1)          # (L, 2*Kh)
    Wp = -(-w_cat.shape[1] // 128) * 128                  # round up to 128
    if Wp > w_cat.shape[1]:
        w_cat = np.pad(w_cat, ((0, 0), (0, Wp - w_cat.shape[1])))
    return jnp.asarray(w_cat, dtype=jnp.bfloat16), Kh, Wp


def _pick_col_tile(total_cols: int, want_min_tiles: int) -> int:
    # Largest lane-dense tile that still yields >= want_min_tiles column tiles.
    for cand in (1024, 512, 256, 128):
        if total_cols % cand == 0 and total_cols // cand >= want_min_tiles:
            return cand
    for cand in (1024, 512, 256, 128):
        if total_cols % cand == 0:
            return cand
    return total_cols


def _select_tiles(N: int, L: int, Wp: int):
    # Row tile: 512 keeps the re-streamed weights compute-bound on v6e/v7x.
    tm = N if N <= 512 else 512
    # Contraction tile: only tile K when it divides L cleanly (keeps masking
    # trivial); otherwise use the full L as one block.
    tk = L
    if L > 1024:
        for cand in (1024, 512, 256):
            if L % cand == 0:
                tk = cand
                break
    # Column tile: make sure a 1-row grid still exposes >= 2 tiles (megacore).
    want_min_tiles = 2 if pl.cdiv(N, tm) == 1 else 1
    tn = _pick_col_tile(Wp, want_min_tiles)

    def budget(tm_, tk_, tn_):
        # double-buffered x(f32) + w(bf16) + out(f32) tiles, plus f32 scratch
        return 2 * (tm_ * tk_ * 4 + tk_ * tn_ * 2 + tm_ * tn_ * 4) + tm_ * tn_ * 4

    cap = 48 * 1024 * 1024   # stay well under v7x's 64 MiB physical VMEM
    while budget(tm, tk, tn) > cap and tm > 128 and tm % 2 == 0:
        tm //= 2
    while budget(tm, tk, tn) > cap and tn > 128:
        tn //= 2
    return tm, tk, tn, budget(tm, tk, tn)


def fourier(x, key, *, probability: float = 1.0):
    """JAX/Pallas equivalent of Fourier.forward.

    With `probability` (host-side gate, mirrors the data-dependent Python
    branch in the PyTorch module -- the two branches have different dtypes so
    it cannot be a traced select), returns fft(x) along the last dim as
    complex64; otherwise returns x untouched.
    """
    u = float(jax.random.uniform(key, ()))   # torch.rand(1) gate
    if not (probability > u):
        return x

    orig_shape = x.shape
    L = orig_shape[-1]
    x2 = x.reshape(-1, L)
    if x2.dtype not in (jnp.float32, jnp.bfloat16):
        x2 = x2.astype(jnp.float32)          # bf16 cast happens in-kernel
    N = x2.shape[0]

    w_cat, Kh, Wp = _dft_weights_bf16(L)     # (L, Wp) bf16, cached per L
    tm, tk, tn, vmem_tile_bytes = _select_tiles(N, L, Wp)
    grid = (pl.cdiv(N, tm), Wp // tn, L // tk)

    cost = pl.CostEstimate(
        flops=2 * N * L * Wp,
        transcendentals=0,
        bytes_accessed=N * L * 4 + L * Wp * 2 + N * Wp * 4,
    )

    out = pl.pallas_call(
        _fft_matmul_kernel,
        out_shape=jax.ShapeDtypeStruct((N, Wp), jnp.float32),
        grid_spec=pltpu.PrefetchScalarGridSpec(
            num_scalar_prefetch=0,
            grid=grid,
            in_specs=[
                # x row/contraction tile (original dtype; cast in kernel)
                pl.BlockSpec((tm, tk), lambda i, j, k: (i, k)),
                # DFT weight tile, streamed (auto double-buffered)
                pl.BlockSpec((tk, tn), lambda i, j, k: (k, j)),
            ],
            out_specs=pl.BlockSpec((tm, tn), lambda i, j, k: (i, j)),
            scratch_shapes=[pltpu.VMEM((tm, tn), jnp.float32)],
        ),
        compiler_params=pltpu.CompilerParams(
            dimension_semantics=("parallel", "parallel", "arbitrary"),
            vmem_limit_bytes=int(min(60 * 1024 * 1024,
                                     vmem_tile_bytes + (4 << 20))),
        ),
        cost_estimate=cost,
    )(x2, w_cat)

    # Hermitian reconstruction: X[k] = conj(X[L-k]) for k = Kh..L-1.
    re = out[:, :Kh]
    im = out[:, Kh:2 * Kh]
    m = L - Kh
    if m > 0:
        re_full = jnp.concatenate([re, re[:, m:0:-1]], axis=1)
        im_full = jnp.concatenate([im, -im[:, m:0:-1]], axis=1)
    else:
        re_full, im_full = re, im
    y = jax.lax.complex(re_full, im_full)    # complex64
    return y.reshape(orig_shape)


if __name__ == "__main__":
    key = jax.random.PRNGKey(0)
    kx, kgate = jax.random.split(key)

    B, C, L = 2, 4, 128
    x = jax.random.normal(kx, (B, C, L), dtype=jnp.float32)

    # probability=1.0 path: FFT applied
    out = jax.block_until_ready(fourier(x, kgate, probability=1.0))

    ref = jnp.fft.fft(x)

    assert out.shape == x.shape
    assert jnp.issubdtype(out.dtype, jnp.complexfloating)
    rel = jnp.linalg.norm((out - ref).reshape(-1)) / jnp.linalg.norm(ref.reshape(-1))
    assert float(rel) < 2e-2, f"relative error too large: {float(rel)}"

    # probability=0.0 path: input returned untouched (stays real)
    out_skip = fourier(x, kgate, probability=0.0)
    assert out_skip.dtype == x.dtype and bool(jnp.array_equal(out_skip, x))

    print("KERNEL_OK")
</pallas_src>

<mosaic_0001>
module attributes {stable_mosaic.version = 11 : i64} {
  func.func @_fft_matmul_kernel(%arg0: i32, %arg1: i32, %arg2: i32, %arg3: memref<8x128xf32, #tpu.memory_space<vmem>>, %arg4: memref<128x128xbf16, #tpu.memory_space<vmem>>, %arg5: memref<8x128xf32, #tpu.memory_space<vmem>>, %arg6: memref<8x128xf32, #tpu.memory_space<vmem>>) attributes {dimension_semantics = [#tpu.dimension_semantics<parallel>, #tpu.dimension_semantics<parallel>, #tpu.dimension_semantics<arbitrary>], iteration_bounds = array<i64: 1, 2, 1>, scalar_prefetch = 0 : i64, scratch_operands = 1 : i64, tpu.core_type = #tpu.core_type<tc>, window_params = [{transform_indices = @transform_0, window_bounds = array<i64: 8, 128>}, {transform_indices = @transform_1, window_bounds = array<i64: 128, 128>}, {transform_indices = @transform_2, window_bounds = array<i64: 8, 128>}]} {
    %c0_i32 = arith.constant 0 : i32
    %0 = arith.cmpi eq, %arg2, %c0_i32 : i32
    %1 = arith.extui %0 : i1 to i32
    %c0_i32_0 = arith.constant 0 : i32
    %2 = arith.cmpi ne, %1, %c0_i32_0 : i32
    scf.if %2 {
      %cst_10 = arith.constant 0.000000e+00 : f32
      %13 = vector.broadcast %cst_10 : f32 to vector<8x128xf32>
      %c0_11 = arith.constant 0 : index
      %c0_12 = arith.constant 0 : index
      %14 = vector.load %arg6[%c0_11, %c0_12] : memref<8x128xf32, #tpu.memory_space<vmem>>, vector<8x128xf32>
      tpu.vector_store %arg6[%c0_11, %c0_12], %13 {strides = array<i32>} : memref<8x128xf32, #tpu.memory_space<vmem>>, vector<8x128xf32>,
    } else {
    }
    %c0 = arith.constant 0 : index
    %c0_1 = arith.constant 0 : index
    %3 = vector.load %arg6[%c0, %c0_1] : memref<8x128xf32, #tpu.memory_space<vmem>>, vector<8x128xf32>
    %c0_2 = arith.constant 0 : index
    %c0_3 = arith.constant 0 : index
    %4 = vector.load %arg3[%c0_2, %c0_3] : memref<8x128xf32, #tpu.memory_space<vmem>>, vector<8x128xf32>
    %5 = arith.truncf %4 : vector<8x128xf32> to vector<8x128xbf16>
    %c0_4 = arith.constant 0 : index
    %c0_5 = arith.constant 0 : index
    %6 = vector.load %arg4[%c0_4, %c0_5] : memref<128x128xbf16, #tpu.memory_space<vmem>>, vector<128x128xbf16>
    %cst = arith.constant dense<0.000000e+00> : vector<8x128xf32>
    %7 = tpu.matmul %5, %6, %cst {dimension_numbers = #tpu.dot_dimension_numbers<[1], [0], [0], [1], [0, 0, 1, 1], [], []>} : vector<8x128xbf16>, vector<128x128xbf16>, vector<8x128xf32> -> vector<8x128xf32>
    %8 = arith.addf %3, %7 : vector<8x128xf32>
    %c0_6 = arith.constant 0 : index
    %c0_7 = arith.constant 0 : index
    %9 = vector.load %arg6[%c0_6, %c0_7] : memref<8x128xf32, #tpu.memory_space<vmem>>, vector<8x128xf32>
    tpu.vector_store %arg6[%c0_6, %c0_7], %8 {strides = array<i32>} : memref<8x128xf32, #tpu.memory_space<vmem>>, vector<8x128xf32>,
    %c0_i32_8 = arith.constant 0 : i32
    %10 = arith.cmpi eq, %arg2, %c0_i32_8 : i32
    %11 = arith.extui %10 : i1 to i32
    %c0_i32_9 = arith.constant 0 : i32
    %12 = arith.cmpi ne, %11, %c0_i32_9 : i32
    scf.if %12 {
      %c0_10 = arith.constant 0 : index
      %c0_11 = arith.constant 0 : index
      %13 = vector.load %arg6[%c0_10, %c0_11] : memref<8x128xf32, #tpu.memory_space<vmem>>, vector<8x128xf32>
      %c0_12 = arith.constant 0 : index
      %c0_13 = arith.constant 0 : index
      %14 = vector.load %arg5[%c0_12, %c0_13] : memref<8x128xf32, #tpu.memory_space<vmem>>, vector<8x128xf32>
      tpu.vector_store %arg5[%c0_12, %c0_13], %13 {strides = array<i32>} : memref<8x128xf32, #tpu.memory_space<vmem>>, vector<8x128xf32>,
    } else {
    }
    return
  }
  func.func @transform_0(%arg0: i32, %arg1: i32, %arg2: i32) -> (i32, i32) {
    %c0_i32 = arith.constant 0 : i32
    return %arg0, %arg2 : i32, i32
  }
  func.func @transform_1(%arg0: i32, %arg1: i32, %arg2: i32) -> (i32, i32) {
    %c0_i32 = arith.constant 0 : i32
    return %arg2, %arg1 : i32, i32
  }
  func.func @transform_2(%arg0: i32, %arg1: i32, %arg2: i32) -> (i32, i32) {
    %c0_i32 = arith.constant 0 : i32
    return %arg0, %arg1 : i32, i32
  }
}

</mosaic_0001>

<bundles_post_ra>
// kernel: tpu_custom_call.1
= control target key start
LH: loop header
LB: loop body
LE: loop exit
PB: predicated region body
PF: predicated region fallthrough
CT: control target
= control target key end

     0   :  { %7 = vsyncpa [#allocation4], 0  ;;  %s924_s0 = inlined_call_operand.hbm [shape: f32[8,128], index: 0, kind: input, shape index: {}]   ;;  %s925_s1 = inlined_call_operand.hbm [shape: bf16[128,256], index: 1, kind: input, shape index: {}]   ;;  %s926_s2 = inlined_call_operand.hbm [shape: f32[8,256], index: 2, kind: output, shape index: {}]  }
   0x1   :  { %8 = vsyncpa [#allocation7], 0 }
   0x2   :  { %10 = vsyncpa [#allocation7 + $0x1], 0 }
   0x3   :  { %11 = vsyncpa [#allocation5], 0 }
   0x4   :  { %13 = vsyncpa [#allocation5 + $0x1], 0  ;;  %s748_s9 = smov 0   ;;  %s750_s10 = smov 0  }
   0x5   :  { %s752_s11 = smov 0   ;;  %s754_s12 = smov 0  }
   0x6   :  { %s756_s13 = smov 0   ;;  %s758_s14 = smov 0  }
   0x7 LB: > { %s447_s15 = sadd.s32 4294967295, %s723_s14   ;;  %s448_s16 = sadd.s32 4294967294, %s723_s14   ;;  %s723_s14 = sphi %s758_s14, %s19_s14   ;;  %s719_s13 = sphi %s756_s13, %s945_s13   ;;  %s715_s12 = sphi %s754_s12, %s944_s12   ;;  %s711_s11 = sphi %s752_s11, %s943_s11   ;;  %s707_s10 = sphi %s750_s10, %s942_s10   ;;  %s703_s9 = sphi %s748_s9, %s941_s9  }
   0x8   : > { %s75_s17 = sadd.s32 1, %s711_s11  ;;  %p82_p0 = scmp.ne.s32.totalorder %s711_s11, %s707_s10 }
   0x9   : > { %p83_p1 = scmp.eq.s32.totalorder %s723_s14, 0  ;;  %p88_p2 = scmp.ne.s32.totalorder %s707_s10, %s703_s9 }
   0xa   : > { %p786_p3 = scmp.eq.s32.totalorder %s447_s15, 0  ;;  %p114_p4 = scmp.eq.s32.totalorder %s447_s15, 1 }
   0xb   : > { %p790_p5 = por %p83_p1, %p82_p0  ;;  %p120_p6 = scmp.eq.s32.totalorder %s448_s16, 1 }
   0xc   : > { %p796_p7 = por %p786_p3, %p88_p2  ;;  %p800_p8 = por %p114_p4, %p82_p0 }
   0xd   : > { %p804_p9 = por %p120_p6, %p88_p2  ;;  %p449_p10 = scmp.ge.s32.totalorder %s723_s14, 1 }
   0xe   : > { %s931_s20 = scalar_select %p796_p7, 1, 0 }
   0xf   : > { %s932_s21 = scalar_select %p800_p8, 1, 0 }
  0x10   : > { %s933_s22 = scalar_select %p804_p9, 1, 0 }
  0x11   : > { %p127_p11 = scmp.lt.s32.totalorder %s723_s14, 3  ;;  %s725_s24 = smov [#allocation3]  }
  0x12   : > { %s143_s25 = sshll.u32 %s725_s24, 4  ;;  %p520_p1 = scmp.lt.s32.totalorder %s723_s14, 2  ;;  %s144_s25 = int_to_ptr.vmem [resolvable:$true] %s143_s25 }
  0x13   : > { %p811_p13 = pnand %p449_p10, %p127_p11  ;;  %s34_s28 = sadd.s32 1, %s719_s13 }
  0x14   : > { %p820_p4 = pnand %p520_p1, %p790_p5  ;;  %p36_p6 = scmp.ge.s32.totalorder %s34_s28, 2 }
  0x15   : > { %p507_p0 = pneg %p811_p13  ;;  %s154_s29 = sand.u32 1, %s711_s11  }
  0x16   : > { %s596_s30 = scalar_lea.vmem %s144_s25, 128  ;;  %p604_p8 = scmp.lt.s32.totalorder %s144_s25, %s144_s25 }
  0x17   : > { %p826_p2 = pnand %p507_p0, %p786_p3  ;;  %p597_p11 = scmp.ne.s32.totalorder %s144_s25, %s596_s30 }
  0x18   : > { %p605_p5 = scmp.lt.s32.totalorder %s596_s30, %s596_s30 }
  0x19   : > { %p587_p10 = pneg %p826_p2 }
  0x1a   : > { %p606_p1 = por %p605_p5, %p604_p8 }
  0x1b   : > { %p599_p12 = pnand %p597_p11, %p587_p10 }
  0x1d   : > { %p600_p9 = pneg %p599_p12 }
  0x1f   : > { %p607_p7 = pnand %p606_p1, %p600_p9 }
  0x21   : > { %610 = shalt.err (!%p607_p7)
}
  0x22   : > { %510 = dma.hbm_to_vmem [thread:$0]  (!%p826_p2), %s924_s0, 128, %s144_s25, [#allocation4]  }
  0x23   : > { %s947_s28 = smov (%p36_p6, %s34_s28), 0  ;;  %s452_s5 = sshll.u32 %s154_s29, 6 }
  0x24   : > { %s71_s6 = ssub.s32 %s719_s13, %s947_s28  ;;  %s453_s7 = sshll.u32 %s719_s13, 6 }
  0x25   : > { %p73_p12 = scmp.eq.s32.totalorder %s71_s6, 0  ;;  %s166_s16 = scalar_lea.hbm %s925_s1, %s453_s7 }
  0x26   : > { %s158_s19 = scalar_lea.vmem [#allocation6], %s452_s5  ;;  %s155_s30 = scalar_lea.sflag [#allocation7], %s154_s29 }
  0x27   : > { %s167_s24 = sshll.u32 %s158_s19, 4  ;;  %p613_p7 = pneg %p820_p4  ;;  %s168_s24 = int_to_ptr.vmem [resolvable:$true] %s167_s24 }
  0x28   : > { %s850_s27 = scalar_select %p73_p12, %s711_s11, %s75_s17  }
  0x29   : > { %s624_s25 = scalar_lea.vmem %s168_s24, 1024  ;;  %s726_s3 = smov [#allocation6]  }
  0x2a   : > { %p625_p8 = scmp.ne.s32.totalorder %s168_s24, %s624_s25  ;;  %s629_s4 = sshll.u32 %s726_s3, 4  ;;  %s630_s4 = int_to_ptr.vmem [resolvable:$false] %s629_s4 }
  0x2b   : > { %s631_s6 = scalar_lea.vmem %s630_s4, 2048  ;;  %p632_p2 = scmp.lt.s32.totalorder %s168_s24, %s630_s4 }
  0x2c   : > { %p627_p9 = pnand %p625_p8, %p613_p7  ;;  %p633_p6 = scmp.lt.s32.totalorder %s631_s6, %s624_s25 }
  0x2e   : > { %p628_p0 = pneg %p627_p9  ;;  %p634_p10 = por %p633_p6, %p632_p2 }
  0x30   : > { %p635_p11 = pnand %p634_p10, %p628_p0 }
  0x32   : > { %638 = shalt.err (!%p635_p11)
}
  0x33   : > { %s727_s5 = smov 128   ;;  %s728_s17 = smov 64  }
  0x34   : > { %s729_s7 = smov 4   ;;  %179 = sbr.rel (%p811_p13) target bundleno = 304 (0x130), region = 28 }
  0x35   : > { %514 = dma.hbm_to_vmem [thread:$0]  (!%p820_p4), %s166_s16, 1024, %s168_s24, %s155_s30, %s727_s5, %s728_s17, %s729_s7  }
  0x39   : > { %690 = dma.done.wait (%p786_p3), [#allocation4], 128  }
  0x3a   : > { %692 = vsyncadd (%p786_p3), [#allocation4], 4294967168  ;;  %s863_s29 = sand.u32 1, %s707_s10   ;;  %p937_p5 = scmp.ne.s32.totalorder %s931_s20, 0 }
  0x3b   : > { %s456_s8 = sshll.u32 %s863_s29, 6  ;;  %s186_s15 = scalar_lea.sflag [#allocation7], %s863_s29 }
  0x3c   : > { %s189_s19 = scalar_lea.vmem [#allocation6], %s456_s8 }
  0x3d   : > { %694 = dma.done.wait (%p937_p5), %s186_s15, 1024  }
  0x3e   : > { %696 = vsyncadd (%p937_p5), %s186_s15, 4294966272  ;;  %v730_v0 = vmov 0.0   ;;  %vm731_vm0 = vmmov 0   ;;  %v577_v1 = vld [vmem:[%s189_s19 + $0x38] sm:$0xff]   ;;  %v578_v2 = vld [vmem:[%s189_s19 + $0x30] sm:$0xff]   ;;  %s457_s18 = sshll.u32 %s863_s29, 3 }
  0x3f   : > { %479 = vmatprep.subr.bf16.mxu0 %v730_v0  ;;  %495 = vmatprep.mubr.msk.bf16.mxu0 %vm731_vm0, %v730_v0  ;;  %v579_v3 = vld [vmem:[%s189_s19 + $0x28] sm:$0xff]   ;;  %v580_v4 = vld [vmem:[%s189_s19 + $0x20] sm:$0xff]   ;;  %v581_v5 = vld [vmem:[%s189_s19 + $0x18] sm:$0xff]   ;;  %s209_s20 = scalar_lea.vmem [#allocation8], %s457_s18  ;;  %s467_s26 = sshll.u32 %s715_s12, 7 }
  0x40   : > { %480 = vmatpush3.bf16.msra.mxu0 %v577_v1  ;;  %v582_v6 = vld [vmem:[%s189_s19 + $0x10] sm:$0xff]   ;;  %v583_v7 = vld [vmem:[%s189_s19 + $0x8] sm:$0xff]   ;;  %v584_v8 = vld [vmem:[%s189_s19] sm:$0xff]   ;;  %s347_s23 = sshll.u32 %s209_s20, 4  ;;  %s878_s30 = scalar_lea.hbm %s926_s2, %s467_s26  ;;  %s873_s23 = int_to_ptr.vmem [resolvable:$true] %s347_s23 }
  0x41   : > { %481 = vmatprep.subr.bf16.mxu0 %v730_v0  ;;  %v218_v9 = vld [vmem:[#allocation3] sm:$0xff]  ;;  %s332_s25 = scalar_lea.sflag [#allocation5], %s863_s29  ;;  %s639_s3 = scalar_lea.vmem %s873_s23, 128 }
  0x42   : > { %v219_v10 = vpack.c.bf16 %v218_v9, %v218_v9  ;;  %p640_p3 = scmp.ne.s32.totalorder %s873_s23, %s639_s3  ;;  %p938_p13 = scmp.ne.s32.totalorder %s932_s21, 0 }
  0x43   : > { %s732_s12 = smov [#allocation8]  }
  0x44   : > { %482 = vmatpush3.bf16.msra.mxu0 %v578_v2  ;;  %p641_p4 = pnand %p640_p3, %p938_p13  ;;  %s643_s4 = sshll.u32 %s732_s12, 4  ;;  %s644_s4 = int_to_ptr.vmem [resolvable:$false] %s643_s4 }
  0x45   : > { %483 = vmatprep.subr.bf16.mxu0 %v730_v0  ;;  %s645_s6 = scalar_lea.vmem %s644_s4, 256  ;;  %p646_p12 = scmp.lt.s32.totalorder %s873_s23, %s644_s4 }
  0x46   : > { %p642_p1 = pneg %p641_p4  ;;  %p647_p7 = scmp.lt.s32.totalorder %s645_s6, %s639_s3 }
  0x48   : > { %484 = vmatpush3.bf16.msra.mxu0 %v579_v3  ;;  %p648_p8 = por %p647_p7, %p646_p12 }
  0x49   : > { %485 = vmatprep.subr.bf16.mxu0 %v730_v0 }
  0x4a   : > { %p649_p9 = pnand %p648_p8, %p642_p1 }
  0x4c   : > { %486 = vmatpush3.bf16.msra.mxu0 %v580_v4 }
  0x4d   : > { %487 = vmatprep.subr.bf16.mxu0 %v730_v0 }
  0x50   : > { %488 = vmatpush3.bf16.msra.mxu0 %v581_v5 }
  0x51   : > { %489 = vmatprep.subr.bf16.mxu0 %v730_v0 }
  0x54   : > { %490 = vmatpush3.bf16.msra.mxu0 %v582_v6 }
  0x55   : > { %491 = vmatprep.subr.bf16.mxu0 %v730_v0 }
  0x58   : > { %492 = vmatpush3.bf16.msra.mxu0 %v583_v7 }
  0x59   : > { %493 = vmatprep.subr.bf16.mxu0 %v730_v0 }
  0x5c   : > { %494 = vmatpush3.bf16.msra.mxu0 %v584_v8 }
  0x5f   : > { %496 = vmatmul.mubr.bf16.vlgmr.msra.gmra.mxu0 %v219_v10 }
 0x11f   : > { %v318_v11 = vpop.f32.mrf.mxu0 }
 0x120   : > { %330 = vst [vmem:[%s209_s20] sm:$0xff] %v318_v11 }
 0x121   : > { %v497_v12 = vpop.f32.mrf.mxu0 }
 0x122   : > { %652 = shalt.err (!%p649_p9)
}
 0x123   : > { %s653_s5 = scalar_lea.hbm %s878_s30, 128  ;;  %s657_s29 = scalar_lea.hbm %s926_s2, 256 }
 0x124   : > { %p654_p0 = scmp.ne.s32.totalorder %s878_s30, %s653_s5  ;;  %p658_p10 = scmp.lt.s32.totalorder %s878_s30, %s926_s2 }
 0x125   : > { %p659_p11 = scmp.lt.s32.totalorder %s657_s29, %s653_s5 }
 0x126   : > { %p655_p2 = pnand %p654_p0, %p938_p13 }
 0x127   : > { %p660_p5 = por %p659_p11, %p658_p10 }
 0x128   : > { %p656_p6 = pneg %p655_p2 }
 0x12a   : > { %p661_p3 = pnand %p660_p5, %p656_p6 }
 0x12c   : > { %664 = shalt.err (!%p661_p3)
}
 0x12d   : > { %505 = dma.vmem_to_hbm [thread:$0]  (%p938_p13), %s873_s23, 128, %s878_s30, %s332_s25   ;;  %v321_v13 = vpop.f32.mrf.mxu0 }
 0x12f   : > { %v498_v14 = vpop.f32.mrf.mxu0 }
 0x130 PF: > { %s359_s19 = sand.u32 1, %s703_s9   ;;  %p939_p4 = scmp.ne.s32.totalorder %s933_s22, 0 }
 0x131   : > { %p940_p1 = scmp.ge.s32.totalorder %s723_s14, 2  ;;  %s360_s18 = scalar_lea.sflag [#allocation5], %s359_s19 }
 0x133   : > { %p516_p12 = pnand %p940_p1, %p939_p4 }
 0x135   : > { %p517_p7 = pneg %p516_p12 }
 0x137   : > { %698 = dma.done.wait (%p517_p7), %s360_s18, 128  }
 0x138   : > { %700 = vsyncadd (%p517_p7), %s360_s18, 4294967168  ;;  %s19_s14 = sadd.s32 1, %s723_s14   ;;  %s941_s9 = smov %s707_s10 }
 0x139   : > { %p16_p8 = scmp.ge.s32.totalorder %s19_s14, 4   ;;  %s942_s10 = smov %s711_s11 }
 0x13a   : > { %s943_s11 = smov %s850_s27  ;;  %s944_s12 = smov %s719_s13 }
 0x13b   : > { %s945_s13 = smov %s947_s28  ;;  %18 = sbr.rel (!%p16_p8) target bundleno = 7 (0x7), region = 87 }
 0x140   :  { %365 = vsyncpa [#allocation4], 1 }
 0x141   :  { %367 = vsyncpa [#allocation4 + $0x1], 1 }
 0x142   :  { %368 = vsyncpa [#allocation7], 1 }
 0x143   :  { %370 = vsyncpa [#allocation7 + $0x1], 1 }
 0x144   :  { %371 = vsyncpa [#allocation5], 1 }
 0x145   :  { %373 = vsyncpa [#allocation5 + $0x1], 1 }

</bundles_post_ra>
